<compile_context>
chip_gen: v7x
topology: tpu7x:2x2x1
jax: 0.10.0
libtpu: 0.0.40
codegen_flags: <defaults>
</compile_context>

<pallas_src>
import functools
import math

import jax
import jax.numpy as jnp
from jax.experimental import pallas as pl
from jax.experimental.pallas import tpu as pltpu

_VMEM = pl.BlockSpec(memory_space=pltpu.MemorySpace.VMEM)


# ------------------------------- Pallas kernel --------------------------------
def _upsample_conv_kernel(x_ref, w_ref, b_ref, o_ref, *, seq_len):
    """Fused nearest-2x upsample + Conv1d(k=3, s=1, p=1) as one im2col matmul.

    x_ref: (N, Cin)   channel-last rows, N = B * L (batches stacked along rows)
    w_ref: (3*Cin, 2*Cout)  fused [even | odd] conv weight
    b_ref: (1, 2*Cout)
    o_ref: (N, 2*Cout)  cols [0:Cout] = output at even positions t = 2m,
                        cols [Cout:]  = output at odd  positions t = 2m+1
    """
    x = x_ref[...].astype(jnp.float32)
    n, cin = x.shape

    # Row-shifted copies of x (previous / next time step). Batches are stacked
    # along the row axis, so zero the shifts at sequence boundaries to prevent
    # cross-batch leakage (row index r = b*L + m).
    zero_row = jnp.zeros((1, cin), jnp.float32)
    xprev = jnp.concatenate([zero_row, x[: n - 1, :]], axis=0)
    xnext = jnp.concatenate([x[1:, :], zero_row], axis=0)
    pos = jax.lax.broadcasted_iota(jnp.int32, (n, 1), 0) % seq_len
    xprev = jnp.where(pos == 0, 0.0, xprev)
    xnext = jnp.where(pos == seq_len - 1, 0.0, xnext)

    # im2col: single MXU matmul with K = 3*Cin, producing even|odd outputs.
    a = jnp.concatenate([xprev, x, xnext], axis=-1)                    # (N, 3*Cin)
    y = jnp.dot(a, w_ref[...], preferred_element_type=jnp.float32) + b_ref[...]
    o_ref[...] = y


# --------------------------------- wrapper ------------------------------------
def upsample_forward(params, x, with_conv=True):
    """PyTorch-equivalent forward.  x: (B, C, L) NCW -> (B, C, 2L)."""
    b, c, l = x.shape
    if not with_conv:
        # Pure nearest-neighbour upsample: no compute, just a repeat.
        return jnp.repeat(x, 2, axis=-1)

    w = params["w"]          # (Cout, Cin, K) PyTorch Conv1d layout
    bias = params["b"]       # (Cout,)

    # Build the fused even/odd weight (3*Cin, 2*Cout) and bias (1, 2*Cout).
    # Tiny one-time transform; hoisted/fused by XLA under jit.
    wk = jnp.transpose(w, (2, 1, 0))                  # (K, Cin, Cout)
    w0, w1, w2 = wk[0], wk[1], wk[2]
    zeros = jnp.zeros_like(w0)
    w_even = jnp.concatenate([w0, w1 + w2, zeros], axis=0)      # (3C, C)
    w_odd = jnp.concatenate([zeros, w0 + w1, w2], axis=0)       # (3C, C)
    w_cat = jnp.concatenate([w_even, w_odd], axis=1)            # (3C, 2C)
    b_cat = jnp.concatenate([bias, bias])[None, :]              # (1, 2C)

    # Channel-last, batch folded into rows: (B, C, L) -> (B*L, C).
    x_flat = jnp.transpose(x, (0, 2, 1)).reshape(b * l, c)

    out_flat = pl.pallas_call(
        functools.partial(_upsample_conv_kernel, seq_len=l),
        out_shape=jax.ShapeDtypeStruct((b * l, 2 * c), jnp.float32),
        in_specs=[_VMEM, _VMEM, _VMEM],
        out_specs=_VMEM,
    )(x_flat.astype(jnp.float32), w_cat.astype(jnp.float32), b_cat.astype(jnp.float32))

    # (B*L, 2C) -> (B, L, 2, C) -> (B, 2L, C) -> (B, C, 2L)
    out = out_flat.reshape(b, l, 2, c).reshape(b, 2 * l, c)
    return jnp.transpose(out, (0, 2, 1))


# ------------------------------ plain-JAX reference ----------------------------
def upsample_reference(params, x, with_conv=True):
    up = jnp.repeat(x, 2, axis=-1)                               # nearest, scale 2
    if not with_conv:
        return up
    w, bias = params["w"], params["b"]
    l2 = up.shape[-1]
    upp = jnp.pad(up, ((0, 0), (0, 0), (1, 1)))
    out = jnp.broadcast_to(bias[None, :, None], (x.shape[0], w.shape[0], l2))
    for i in range(3):
        out = out + jnp.einsum("bcl,oc->bol", upp[:, :, i:i + l2], w[:, :, i])
    return out


# ------------------------------------ main -------------------------------------
if __name__ == "__main__":
    key = jax.random.PRNGKey(0)
    k_w, k_b, k_x = jax.random.split(key, 3)

    B, C, L = 2, 64, 16                      # small shapes consistent with the diffusion U-Net
    fan_in = C * 3
    bound = 1.0 / math.sqrt(fan_in)          # PyTorch Conv1d default init range
    params = {
        "w": jax.random.uniform(k_w, (C, C, 3), jnp.float32, -bound, bound),  # (Cout, Cin, K)
        "b": jax.random.uniform(k_b, (C,), jnp.float32, -bound, bound),
    }
    x = jax.random.normal(k_x, (B, C, L), jnp.float32)           # NCW like PyTorch

    fwd = jax.jit(upsample_forward)
    out = fwd(params, x)
    jax.block_until_ready(out)
    assert out.shape == (B, C, 2 * L), out.shape

    ref = upsample_reference(params, x)
    err = float(jnp.max(jnp.abs(out - ref)))
    assert err < 5e-2, f"max abs error vs reference too large: {err}"

    print("KERNEL_OK")
</pallas_src>

<mosaic_0001>
module attributes {stable_mosaic.version = 11 : i64} {
  func.func @_upsample_conv_kernel(%arg0: memref<32x64xf32, #tpu.memory_space<vmem>>, %arg1: memref<192x128xf32, #tpu.memory_space<vmem>>, %arg2: memref<1x128xf32, #tpu.memory_space<vmem>>, %arg3: memref<32x128xf32, #tpu.memory_space<vmem>>) attributes {dimension_semantics = [], scalar_prefetch = 0 : i64, scratch_operands = 0 : i64, tpu.core_type = #tpu.core_type<tc>} {
    %c0 = arith.constant 0 : index
    %c0_0 = arith.constant 0 : index
    %0 = vector.load %arg0[%c0, %c0_0] : memref<32x64xf32, #tpu.memory_space<vmem>>, vector<32x64xf32>
    %cst = arith.constant 0.000000e+00 : f32
    %1 = vector.broadcast %cst : f32 to vector<1x64xf32>
    %2 = vector.extract_strided_slice %0 {offsets = [0, 0], sizes = [31, 64], strides = [1, 1]} : vector<32x64xf32> to vector<31x64xf32>
    %3 = tpu.concatenate %1, %2 in 0 : vector<1x64xf32>, vector<31x64xf32> -> vector<32x64xf32>
    %4 = vector.extract_strided_slice %0 {offsets = [1, 0], sizes = [31, 64], strides = [1, 1]} : vector<32x64xf32> to vector<31x64xf32>
    %5 = tpu.concatenate %4, %1 in 0 : vector<31x64xf32>, vector<1x64xf32> -> vector<32x64xf32>
    %6 = tpu.iota {dimensions = array<i32: 0>} : vector<32x1xi32>
    %c16_i32 = arith.constant 16 : i32
    %c0_i32 = arith.constant 0 : i32
    %7 = arith.cmpi eq, %c16_i32, %c0_i32 : i32
    %c1_i32 = arith.constant 1 : i32
    %8 = arith.select %7, %c1_i32, %c16_i32 : i32
    %9 = vector.broadcast %8 : i32 to vector<32x1xi32>
    %10 = arith.remsi %6, %9 : vector<32x1xi32>
    %c0_i32_1 = arith.constant 0 : i32
    %11 = vector.broadcast %c0_i32_1 : i32 to vector<32x1xi32>
    %12 = arith.cmpi ne, %10, %11 : vector<32x1xi32>
    %c0_i32_2 = arith.constant 0 : i32
    %13 = vector.broadcast %c0_i32_2 : i32 to vector<32x1xi32>
    %14 = arith.cmpi slt, %10, %13 : vector<32x1xi32>
    %c0_i32_3 = arith.constant 0 : i32
    %15 = arith.cmpi slt, %8, %c0_i32_3 : i32
    %16 = vector.broadcast %15 : i1 to vector<32x1xi1>
    %17 = vector.broadcast %16 : vector<32x1xi1> to vector<32x1xi1>
    %18 = arith.xori %14, %17 : vector<32x1xi1>
    %19 = arith.andi %18, %12 : vector<32x1xi1>
    %20 = vector.broadcast %8 : i32 to vector<32x1xi32>
    %21 = arith.addi %10, %20 : vector<32x1xi32>
    %22 = arith.select %19, %21, %10 : vector<32x1xi1>, vector<32x1xi32>
    %c0_i32_4 = arith.constant 0 : i32
    %23 = vector.broadcast %c0_i32_4 : i32 to vector<32x1xi32>
    %24 = arith.cmpi eq, %22, %23 : vector<32x1xi32>
    %cst_5 = arith.constant 0.000000e+00 : f32
    %25 = vector.shape_cast %24 : vector<32x1xi1> to vector<32x1xi1>
    %26 = vector.broadcast %25 : vector<32x1xi1> to vector<32x64xi1>
    %27 = vector.broadcast %cst_5 : f32 to vector<32x64xf32>
    %28 = arith.select %26, %27, %3 : vector<32x64xi1>, vector<32x64xf32>
    %c15_i32 = arith.constant 15 : i32
    %29 = vector.broadcast %c15_i32 : i32 to vector<32x1xi32>
    %30 = arith.cmpi eq, %22, %29 : vector<32x1xi32>
    %cst_6 = arith.constant 0.000000e+00 : f32
    %31 = vector.shape_cast %30 : vector<32x1xi1> to vector<32x1xi1>
    %32 = vector.broadcast %31 : vector<32x1xi1> to vector<32x64xi1>
    %33 = vector.broadcast %cst_6 : f32 to vector<32x64xf32>
    %34 = arith.select %32, %33, %5 : vector<32x64xi1>, vector<32x64xf32>
    %35 = tpu.concatenate %28, %0, %34 in 1 : vector<32x64xf32>, vector<32x64xf32>, vector<32x64xf32> -> vector<32x192xf32>
    %c0_7 = arith.constant 0 : index
    %c0_8 = arith.constant 0 : index
    %36 = vector.load %arg1[%c0_7, %c0_8] : memref<192x128xf32, #tpu.memory_space<vmem>>, vector<192x128xf32>
    %cst_9 = arith.constant dense<0.000000e+00> : vector<32x128xf32>
    %37 = tpu.matmul %35, %36, %cst_9 {dimension_numbers = #tpu.dot_dimension_numbers<[1], [0], [0], [1], [0, 0, 1, 1], [], []>} : vector<32x192xf32>, vector<192x128xf32>, vector<32x128xf32> -> vector<32x128xf32>
    %c0_10 = arith.constant 0 : index
    %c0_11 = arith.constant 0 : index
    %38 = vector.load %arg2[%c0_10, %c0_11] : memref<1x128xf32, #tpu.memory_space<vmem>>, vector<1x128xf32>
    %39 = vector.broadcast %38 : vector<1x128xf32> to vector<32x128xf32>
    %40 = arith.addf %37, %39 : vector<32x128xf32>
    %c0_12 = arith.constant 0 : index
    %c0_13 = arith.constant 0 : index
    %41 = vector.load %arg3[%c0_12, %c0_13] : memref<32x128xf32, #tpu.memory_space<vmem>>, vector<32x128xf32>
    tpu.vector_store %arg3[%c0_12, %c0_13], %40 {strides = array<i32>} : memref<32x128xf32, #tpu.memory_space<vmem>>, vector<32x128xf32>,
    return
  }
}

</mosaic_0001>

<bundles_post_ra>
// kernel: upsample_forward.1
= control target key start
LH: loop header
LB: loop body
LE: loop exit
PB: predicated region body
PF: predicated region fallthrough
CT: control target
= control target key end

     0   :  { %v363_v3 = vmov 0.0|0.0   ;;  %vm35_vm0 = vcmask 1046528   ;;  %vm22_vm1 = vcmask 1040384   ;;  %vm145_vm2 = vcmask 523264   ;;  %s560_s0 = inlined_call_operand.vmem [shape: f32[32,64], index: 0, kind: input, shape index: {}]   ;;  %s561_s1 = inlined_call_operand.vmem [shape: f32[192,128], index: 1, kind: input, shape index: {}]   ;;  %s562_s2 = inlined_call_operand.vmem [shape: f32[1,128], index: 2, kind: input, shape index: {}]   ;;  %s563_s3 = inlined_call_operand.vmem [shape: f32[32,128], index: 3, kind: output, shape index: {}]  }
   0x1   :  { %v388_v0 = vld [vmem:[%s560_s0] sm:$0xff]  ;;  %v16_v1 = vld [vmem:[%s560_s0 + $0x10] sm:$0xff]  ;;  %v15_v2 = vld [vmem:[%s560_s0 + $0x8] sm:$0xff]  ;;  %291 = vmatprep.subr.bf16.mxu0 %v363_v3  ;;  %327 = vmatprep.subr.bf16.mxu1 %v363_v3  ;;  %v48_v58 = vlaneseq }
   0x2   :  { %v26_v4 = vrot.slane %v16_v1, 7  ;;  %v353_v5 = vpack.i.bf16 %v16_v1, %v388_v0  ;;  %v17_v6 = vld [vmem:[%s560_s0 + $0x18] sm:$0xff]  ;;  %v24_v7 = vrot.slane %v15_v2, 7  ;;  %v150_v8 = vld [vmem:[%s561_s1] sm:$0xff]  ;;  %v151_v9 = vld [vmem:[%s561_s1 + $0x8] sm:$0xff]  ;;  %v36_v13 = vrot.slane %v388_v0, 1 }
   0x3   :  { %v292_v10 = vpack.c.bf16 %v151_v9, %v150_v8  ;;  %v152_v11 = vld [vmem:[%s561_s1 + $0x10] sm:$0xff]  ;;  %v153_v12 = vld [vmem:[%s561_s1 + $0x18] sm:$0xff]  ;;  %v37_v14 = vrot.slane %v15_v2, 1  ;;  %s364_s0 = smov 64   ;;  %v358_v15 = vpack.i.bf16 %v17_v6, %v15_v2  ;;  %v39_v16 = vrot.slane %v16_v1, 1  ;;  %v154_v20 = vld [vmem:[%s561_s1 + $0x20] sm:$0xff] }
   0x4   :  { %354 = vrot.lane.b32.xlu0 %v353_v5, %s364_s0  ;;  %v41_v17 = vrot.slane %v17_v6, 1  ;;  %v295_v18 = vpack.c.bf16 %v153_v12, %v152_v11  ;;  %v155_v21 = vld [vmem:[%s561_s1 + $0x28] sm:$0xff]  ;;  %v426_v23 = vsel %vm22_vm1, %v24_v7, %v26_v4  ;;  %v23_v26 = vrot.slane %v388_v0, 7  ;;  %v156_v28 = vld [vmem:[%s561_s1 + $0x30] sm:$0xff]  ;;  %v157_v29 = vld [vmem:[%s561_s1 + $0x38] sm:$0xff] }
   0x5   :  { %293 = vmatpush1.bf16.msra.mxu0 %v292_v10  ;;  %339 = vmatpush1.bf16.msra.mxu1 %v292_v10  ;;  %v38_v19 = vsel %vm35_vm0, %v36_v13, %v37_v14  ;;  %v434_v25 = vsel %vm35_vm0, %v37_v14, %v39_v16  ;;  %v298_v27 = vpack.c.bf16 %v155_v21, %v154_v20  ;;  %v28_v31 = vrot.slane %v17_v6, 7  ;;  %v158_v34 = vld [vmem:[%s561_s1 + $0x40] sm:$0xff]  ;;  %v159_v35 = vld [vmem:[%s561_s1 + $0x48] sm:$0xff]  ;;  %v160_v37 = vld [vmem:[%s561_s1 + $0x50] sm:$0xff] }
   0x6   :  { %294 = vmatprep.subr.bf16.mxu0 %v363_v3  ;;  %328 = vmatprep.subr.bf16.mxu1 %v363_v3  ;;  %v42_v22 = vsel %vm35_vm0, %v39_v16, %v41_v17  ;;  %v429_v24 = vsel %vm35_vm0, %v41_v17, 0.0  ;;  %v448_v30 = vsel %vm22_vm1, %v23_v26, %v24_v7  ;;  %v301_v32 = vpack.c.bf16 %v157_v29, %v156_v28  ;;  %v161_v38 = vld [vmem:[%s561_s1 + $0x58] sm:$0xff]  ;;  %v162_v40 = vld [vmem:[%s561_s1 + $0x60] sm:$0xff]  ;;  %v163_v41 = vld [vmem:[%s561_s1 + $0x68] sm:$0xff] }
   0x7   :  { %287 = vmatprep.mubr.msk.f32.mxu0 %vm145_vm2, %v38_v19  ;;  %289 = vmatprep.mubr.msk.f32.mxu1 %vm145_vm2, %v42_v22  ;;  %v451_v33 = vsel %vm22_vm1, %v26_v4, %v28_v31  ;;  %v304_v36 = vpack.c.bf16 %v159_v35, %v158_v34  ;;  %v307_v39 = vpack.c.bf16 %v161_v38, %v160_v37  ;;  %v164_v43 = vld [vmem:[%s561_s1 + $0x70] sm:$0xff]  ;;  %v165_v44 = vld [vmem:[%s561_s1 + $0x78] sm:$0xff]  ;;  %v166_v46 = vld [vmem:[%s561_s1 + $0x80] sm:$0xff]  ;;  %v49_v59 = vshrl.u32 %v48_v58, 7 }
   0x8   :  { %359 = vrot.lane.b32.xlu0 %v358_v15, %s364_s0  ;;  %v310_v42 = vpack.c.bf16 %v163_v41, %v162_v40  ;;  %v313_v45 = vpack.c.bf16 %v165_v44, %v164_v43  ;;  %v167_v47 = vld [vmem:[%s561_s1 + $0x88] sm:$0xff]  ;;  %v168_v49 = vld [vmem:[%s561_s1 + $0x90] sm:$0xff]  ;;  %v169_v50 = vld [vmem:[%s561_s1 + $0x98] sm:$0xff]  ;;  %v34_v5 = vsel %vm22_vm1, 0.0, %v23_v26 }
   0x9   :  { %296 = vmatpush1.bf16.msra.mxu0 %v295_v18  ;;  %340 = vmatpush1.bf16.msra.mxu1 %v295_v18  ;;  %v316_v48 = vpack.c.bf16 %v167_v47, %v166_v46  ;;  %v319_v51 = vpack.c.bf16 %v169_v50, %v168_v49  ;;  %v170_v52 = vld [vmem:[%s561_s1 + $0xa0] sm:$0xff]  ;;  %v171_v53 = vld [vmem:[%s561_s1 + $0xa8] sm:$0xff]  ;;  %v172_v55 = vld [vmem:[%s561_s1 + $0xb0] sm:$0xff]  ;;  %v51_v60 = vadd.s32 16, %v49_v59  ;;  %v50_v61 = vadd.s32 8, %v49_v59 }
   0xa   :  { %297 = vmatprep.subr.bf16.mxu0 %v363_v3  ;;  %329 = vmatprep.subr.bf16.mxu1 %v363_v3  ;;  %v322_v54 = vpack.c.bf16 %v171_v53, %v170_v52  ;;  %v173_v56 = vld [vmem:[%s561_s1 + $0xb8] sm:$0xff]  ;;  %v52_v62 = vadd.s32 24, %v49_v59  ;;  %v57_v63 = vand.u32 15, %v49_v59  ;;  %v286_v20 = vld [vmem:[%s562_s2] ss:$0 sm:$0xff] }
   0xb   :  { %v325_v57 = vpack.c.bf16 %v173_v56, %v172_v55  ;;  %v71_v1 = vand.u32 15, %v51_v60  ;;  %v64_v2 = vand.u32 15, %v50_v61 }
   0xc   :  { %v78_v4 = vand.u32 15, %v52_v62  ;;  %vm101_vm3 = vcmp.eq.s32.totalorder %v57_v63, 0 }
   0xd   :  { %299 = vmatpush1.bf16.msra.mxu0 %v298_v27  ;;  %341 = vmatpush1.bf16.msra.mxu1 %v298_v27  ;;  %vm103_vm4 = vcmp.eq.s32.totalorder %v71_v1, 0  ;;  %vm522_vm5 = vcmp.eq.s32.totalorder %v64_v2, 15  ;;  %v113_v8 = vsel %vm101_vm3, 0.0, %v34_v5 }
   0xe   :  { %300 = vmatprep.subr.bf16.mxu0 %v363_v3  ;;  %330 = vmatprep.subr.bf16.mxu1 %v363_v3  ;;  %vm526_vm6 = vcmp.eq.s32.totalorder %v78_v4, 15  ;;  %v115_v9 = vsel %vm103_vm4, 0.0, %v426_v23  ;;  %v130_v0 = vsel %vm522_vm5, 0.0, %v434_v25 }
   0xf   :  { %v132_v12 = vsel %vm526_vm6, 0.0, %v429_v24 }
  0x11   :  { %302 = vmatpush1.bf16.msra.mxu0 %v301_v32  ;;  %342 = vmatpush1.bf16.msra.mxu1 %v301_v32 }
  0x12   :  { %303 = vmatprep.subr.bf16.mxu0 %v363_v3  ;;  %331 = vmatprep.subr.bf16.mxu1 %v363_v3 }
  0x15   :  { %305 = vmatpush1.bf16.msra.mxu0 %v304_v36  ;;  %343 = vmatpush1.bf16.msra.mxu1 %v304_v36 }
  0x16   :  { %306 = vmatprep.subr.bf16.mxu0 %v363_v3  ;;  %332 = vmatprep.subr.bf16.mxu1 %v363_v3 }
  0x19   :  { %308 = vmatpush1.bf16.msra.mxu0 %v307_v39  ;;  %344 = vmatpush1.bf16.msra.mxu1 %v307_v39 }
  0x1a   :  { %309 = vmatprep.subr.bf16.mxu0 %v363_v3  ;;  %333 = vmatprep.subr.bf16.mxu1 %v363_v3 }
  0x1d   :  { %311 = vmatpush1.bf16.msra.mxu0 %v310_v42  ;;  %345 = vmatpush1.bf16.msra.mxu1 %v310_v42 }
  0x1e   :  { %312 = vmatprep.subr.bf16.mxu0 %v363_v3  ;;  %334 = vmatprep.subr.bf16.mxu1 %v363_v3 }
  0x21   :  { %314 = vmatpush1.bf16.msra.mxu0 %v313_v45  ;;  %346 = vmatpush1.bf16.msra.mxu1 %v313_v45 }
  0x22   :  { %315 = vmatprep.subr.bf16.mxu0 %v363_v3  ;;  %335 = vmatprep.subr.bf16.mxu1 %v363_v3 }
  0x25   :  { %317 = vmatpush1.bf16.msra.mxu0 %v316_v48  ;;  %347 = vmatpush1.bf16.msra.mxu1 %v316_v48 }
  0x26   :  { %318 = vmatprep.subr.bf16.mxu0 %v363_v3  ;;  %336 = vmatprep.subr.bf16.mxu1 %v363_v3 }
  0x29   :  { %320 = vmatpush1.bf16.msra.mxu0 %v319_v51  ;;  %348 = vmatpush1.bf16.msra.mxu1 %v319_v51 }
  0x2a   :  { %321 = vmatprep.subr.bf16.mxu0 %v363_v3  ;;  %337 = vmatprep.subr.bf16.mxu1 %v363_v3 }
  0x2d   :  { %323 = vmatpush1.bf16.msra.mxu0 %v322_v54  ;;  %349 = vmatpush1.bf16.msra.mxu1 %v322_v54 }
  0x2e   :  { %324 = vmatprep.subr.bf16.mxu0 %v363_v3  ;;  %338 = vmatprep.subr.bf16.mxu1 %v363_v3 }
  0x31   :  { %326 = vmatpush1.bf16.msra.mxu0 %v325_v57  ;;  %350 = vmatpush1.bf16.msra.mxu1 %v325_v57 }
  0x76   :  { %v355_v7 = vpop.permute.xlu0 %354 }
  0x77   :  { %v357_v10 = vunpack.i.h.bf16 %v355_v7  ;;  %v356_v11 = vunpack.i.l.bf16 %v355_v7 }
  0x79   :  { %v146_v13 = vsel %vm145_vm2, %v113_v8, %v356_v11  ;;  %v148_v14 = vsel %vm145_vm2, %v115_v9, %v357_v10 }
  0x7a   :  { %v360_v15 = vpop.permute.xlu0 %359  ;;  %258 = vmatmul.mubr.f32.vlgmr.msra.gmra.mrb[0].mxu0 %v146_v13  ;;  %268 = vmatmul.mubr.f32.vlgmr.msra.gmra.mrb[0].mxu1 %v148_v14 }
  0x7b   :  { %v362_v16 = vunpack.i.h.bf16 %v360_v15  ;;  %v361_v17 = vunpack.i.l.bf16 %v360_v15  ;;  %288 = vmatprep.mubr.msk.f32.mxu0 %vm145_vm2, %v130_v0  ;;  %290 = vmatprep.mubr.msk.f32.mxu1 %vm145_vm2, %v132_v12 }
  0x7d   :  { %v147_v18 = vsel %vm145_vm2, %v448_v30, %v361_v17  ;;  %v149_v19 = vsel %vm145_vm2, %v451_v33, %v362_v16 }
  0x7e   :  { %263 = vmatmul.mubr.f32.gmra.mrb[2].mxu0 %v147_v18  ;;  %273 = vmatmul.mubr.f32.gmra.mrb[2].mxu1 %v149_v19 }
 0x14d   :  { %v259_v21 = vpop.f32.mrb[0].mxu0  ;;  %v269_v22 = vpop.f32.mrb[0].mxu1 }
 0x14e   :  { %v260_v23 = vadd.f32 %v286_v20, %v259_v21  ;;  %v270_v24 = vadd.f32 %v286_v20, %v269_v22  ;;  %v261_v25 = vpop.f32.mrb[1].mxu0  ;;  %v271_v26 = vpop.f32.mrb[1].mxu1 }
 0x150   :  { %278 = vst [vmem:[%s563_s3] sm:$0xff] %v260_v23  ;;  %280 = vst [vmem:[%s563_s3 + $0x10] sm:$0xff] %v270_v24 }
 0x151   :  { %v264_v27 = vpop.f32.mrb[2].mxu0  ;;  %v274_v28 = vpop.f32.mrb[2].mxu1 }
 0x152   :  { %v265_v29 = vadd.f32 %v286_v20, %v264_v27  ;;  %v275_v30 = vadd.f32 %v286_v20, %v274_v28  ;;  %v266_v31 = vpop.f32.mrb[3].mxu0  ;;  %v276_v32 = vpop.f32.mrb[3].mxu1 }
 0x154   :  { %279 = vst [vmem:[%s563_s3 + $0x8] sm:$0xff] %v265_v29  ;;  %281 = vst [vmem:[%s563_s3 + $0x18] sm:$0xff] %v275_v30 }

</bundles_post_ra>
